<compile_context>
chip_gen: v7x
topology: tpu7x:2x2x1
jax: 0.10.0
libtpu: 0.0.40
codegen_flags: <defaults>
</compile_context>

<pallas_src>
import functools

import jax
import jax.numpy as jnp
from jax.experimental import pallas as pl
from jax.experimental.pallas import tpu as pltpu


def _round_up(x, m):
    return ((x + m - 1) // m) * m


def _cls_head_kernel(x_ref, w_ref, b_ref, o_ref):
    # x_ref: [tile_b, H]   (CLS rows only)
    # w_ref: [H, L_pad]    (transposed weight, label dim zero-padded to 128 lanes)
    # b_ref: [1, L_pad]
    # o_ref: [tile_b, L_pad]
    y = jnp.dot(x_ref[...], w_ref[...], preferred_element_type=jnp.float32)
    o_ref[...] = (y + b_ref[...].astype(jnp.float32)).astype(o_ref.dtype)


def prepare_head_params(weight, bias):
    """Transpose + lane-pad Linear(H->L) params ONCE; cache/reuse across calls."""
    L, H = weight.shape
    L_pad = _round_up(max(L, 128), 128)   # lane-dense MXU output, unmasked stores
    w_t = jnp.zeros((H, L_pad), dtype=weight.dtype).at[:, :L].set(weight.T)
    b2d = jnp.zeros((1, L_pad), dtype=bias.dtype).at[0, :L].set(bias)
    return w_t, b2d


@functools.partial(jax.jit, static_argnames=("num_labels", "max_tile_b"))
def roberta_classification_head(features, w_t, b2d, num_labels, *, max_tile_b=256):
    """features: [B, S, H]; (w_t, b2d) from prepare_head_params; -> [B, num_labels]."""
    B, S, H = features.shape
    L_pad = w_t.shape[1]
    out_dtype = features.dtype
    itemsize = jnp.dtype(out_dtype).itemsize

    # Sublane alignment for batch tiles: 8 rows for 4-byte dtypes, 16 for bf16.
    row_align = 8 * max(1, 4 // itemsize)

    # Adaptive batch tile: >= 2 grid steps whenever possible, <= max_tile_b rows,
    # row_align-aligned.  Boundary blocks are partial (no wrapper-side padding).
    if B <= row_align:
        tile_b = row_align
    else:
        n_steps = max(2, pl.cdiv(B, max_tile_b))
        tile_b = min(_round_up(pl.cdiv(B, n_steps), row_align),
                     _round_up(B, row_align))
    grid = (pl.cdiv(B, tile_b),)

    # In-kernel CLS extraction: view features as [B, S*H] (free bitcast under
    # jit for contiguous minor dims) and let the BlockSpec DMA only the first
    # H lanes of each row.  Requires H % 128 == 0 (true for 768/1024); other
    # hidden sizes fall back to a wrapper slice (still correct, one extra copy).
    if H % 128 == 0:
        x_in = features.reshape(B, S * H)
    else:
        x_in = features[:, 0, :]
    x_spec = pl.BlockSpec((tile_b, H), lambda i: (i, 0))

    # Raise the scoped-VMEM limit only if actually needed; cap at 64 MiB (v7x).
    need = (2 * tile_b * H * itemsize                        # x (double-buffered)
            + w_t.size * jnp.dtype(w_t.dtype).itemsize       # weight (resident)
            + b2d.size * jnp.dtype(b2d.dtype).itemsize       # bias (resident)
            + 2 * tile_b * L_pad * itemsize                  # out (double-buffered)
            + (2 << 20))                                     # headroom
    vmem_limit = None if need <= (32 << 20) else int(min(need, 64 << 20))

    out = pl.pallas_call(
        _cls_head_kernel,
        out_shape=jax.ShapeDtypeStruct((B, L_pad), out_dtype),
        grid_spec=pltpu.PrefetchScalarGridSpec(
            num_scalar_prefetch=0,
            grid=grid,
            in_specs=[
                x_spec,                                       # CLS rows (tiled over batch)
                pl.BlockSpec((H, L_pad), lambda i: (0, 0)),   # weight (resident, DMA'd once)
                pl.BlockSpec((1, L_pad), lambda i: (0, 0)),   # bias   (resident, DMA'd once)
            ],
            out_specs=pl.BlockSpec((tile_b, L_pad), lambda i: (i, 0)),
        ),
        compiler_params=pltpu.CompilerParams(
            dimension_semantics=("parallel",),
            vmem_limit_bytes=vmem_limit,
        ),
    )(x_in, w_t, b2d)

    return out[:, :num_labels]


def _check(B, S, H, L, key):
    k_feat, k_w, k_b = jax.random.split(key, 3)
    features = jax.random.normal(k_feat, (B, S, H), dtype=jnp.float32)
    weight = jax.random.normal(k_w, (L, H), dtype=jnp.float32) * 0.02
    bias = jax.random.normal(k_b, (L,), dtype=jnp.float32) * 0.02

    # Parameter prep (transpose + lane padding) done once, outside the hot path.
    w_t, b2d = prepare_head_params(weight, bias)

    out = roberta_classification_head(features, w_t, b2d, L)
    out = jax.block_until_ready(out)

    ref = features[:, 0, :] @ weight.T + bias
    assert out.shape == (B, L)
    assert jnp.allclose(out, ref, atol=1e-5, rtol=1e-5)


if __name__ == "__main__":
    key = jax.random.PRNGKey(0)
    k0, k1 = jax.random.split(key)

    # Main path: lane-aligned hidden size (in-kernel CLS extraction).
    _check(B=4, S=8, H=128, L=4, key=k0)
    # Fallback path: unaligned hidden size (wrapper CLS slice).
    _check(B=2, S=8, H=32, L=4, key=k1)

    print("KERNEL_OK")
</pallas_src>

<mosaic_0001>
module attributes {stable_mosaic.version = 11 : i64} {
  func.func @_cls_head_kernel(%arg0: i32, %arg1: memref<8x128xf32, #tpu.memory_space<vmem>>, %arg2: memref<128x128xf32, #tpu.memory_space<vmem>>, %arg3: memref<1x128xf32, #tpu.memory_space<vmem>>, %arg4: memref<8x128xf32, #tpu.memory_space<vmem>>) attributes {dimension_semantics = [#tpu.dimension_semantics<parallel>], iteration_bounds = array<i64: 1>, scalar_prefetch = 0 : i64, scratch_operands = 0 : i64, tpu.core_type = #tpu.core_type<tc>, window_params = [{transform_indices = @transform_0, window_bounds = array<i64: 8, 128>}, {pipeline_mode = #tpu.pipeline_mode<synchronous>, transform_indices = @transform_1, window_bounds = array<i64: 128, 128>}, {pipeline_mode = #tpu.pipeline_mode<synchronous>, transform_indices = @transform_2, window_bounds = array<i64: 1, 128>}, {transform_indices = @transform_3, window_bounds = array<i64: 8, 128>}]} {
    %c0 = arith.constant 0 : index
    %c0_0 = arith.constant 0 : index
    %0 = vector.load %arg1[%c0, %c0_0] : memref<8x128xf32, #tpu.memory_space<vmem>>, vector<8x128xf32>
    %c0_1 = arith.constant 0 : index
    %c0_2 = arith.constant 0 : index
    %1 = vector.load %arg2[%c0_1, %c0_2] : memref<128x128xf32, #tpu.memory_space<vmem>>, vector<128x128xf32>
    %cst = arith.constant dense<0.000000e+00> : vector<8x128xf32>
    %2 = tpu.matmul %0, %1, %cst {dimension_numbers = #tpu.dot_dimension_numbers<[1], [0], [0], [1], [0, 0, 1, 1], [], []>} : vector<8x128xf32>, vector<128x128xf32>, vector<8x128xf32> -> vector<8x128xf32>
    %c0_3 = arith.constant 0 : index
    %c0_4 = arith.constant 0 : index
    %3 = vector.load %arg3[%c0_3, %c0_4] : memref<1x128xf32, #tpu.memory_space<vmem>>, vector<1x128xf32>
    %4 = vector.broadcast %3 : vector<1x128xf32> to vector<8x128xf32>
    %5 = arith.addf %2, %4 : vector<8x128xf32>
    %c0_5 = arith.constant 0 : index
    %c0_6 = arith.constant 0 : index
    %6 = vector.load %arg4[%c0_5, %c0_6] : memref<8x128xf32, #tpu.memory_space<vmem>>, vector<8x128xf32>
    tpu.vector_store %arg4[%c0_5, %c0_6], %5 {strides = array<i32>} : memref<8x128xf32, #tpu.memory_space<vmem>>, vector<8x128xf32>,
    return
  }
  func.func @transform_0(%arg0: i32) -> (i32, i32) {
    %c0_i32 = arith.constant 0 : i32
    %c0_i32_0 = arith.constant 0 : i32
    return %arg0, %c0_i32 : i32, i32
  }
  func.func @transform_1(%arg0: i32) -> (i32, i32) {
    %c0_i32 = arith.constant 0 : i32
    %c0_i32_0 = arith.constant 0 : i32
    %c0_i32_1 = arith.constant 0 : i32
    return %c0_i32, %c0_i32_0 : i32, i32
  }
  func.func @transform_2(%arg0: i32) -> (i32, i32) {
    %c0_i32 = arith.constant 0 : i32
    %c0_i32_0 = arith.constant 0 : i32
    %c0_i32_1 = arith.constant 0 : i32
    return %c0_i32, %c0_i32_0 : i32, i32
  }
  func.func @transform_3(%arg0: i32) -> (i32, i32) {
    %c0_i32 = arith.constant 0 : i32
    %c0_i32_0 = arith.constant 0 : i32
    return %arg0, %c0_i32 : i32, i32
  }
}

</mosaic_0001>

<bundles_post_ra>
// kernel: roberta_classification_head.1
= control target key start
LH: loop header
LB: loop body
LE: loop exit
PB: predicated region body
PF: predicated region fallthrough
CT: control target
= control target key end

     0   :  { %8 = vsyncpa [#allocation4], 0  ;;  %s371_s0 = inlined_call_operand.vmem [shape: f32[4,1024], index: 0, kind: input, shape index: {}]   ;;  %s372_s1 = inlined_call_operand.hbm [shape: f32[128,128], index: 1, kind: input, shape index: {}]   ;;  %s373_s2 = inlined_call_operand.vmem [shape: f32[1,128], index: 2, kind: input, shape index: {}]   ;;  %s374_s3 = inlined_call_operand.hbm [shape: f32[4,128], index: 3, kind: output, shape index: {}]  }
   0x1   :  { %9 = vsyncpa [#allocation5], 0  ;;  %v27_v0 = vld [vmem:[%s371_s0] sm:$0xf]  ;;  %s312_s14 = smov [#allocation3]   ;;  %s264_s18 = scalar_lea.hbm %s372_s1, 2048 }
   0x2   :  { %28 = vst [vmem:[#allocation2] sm:$0xf] %v27_v0  ;;  %s48_s15 = sshll.u32 %s312_s14, 4  ;;  %p265_p0 = scmp.ne.s32.totalorder %s372_s1, %s264_s18  ;;  %s49_s15 = int_to_ptr.vmem [resolvable:$true] %s48_s15 }
   0x3   :  { %p268_p1 = scmp.lt.u32.totalorder %s264_s18, %s372_s1 }
   0x5   :  { %p270_p2 = pnand %p268_p1, %p265_p0 }
   0x7   :  { %273 = shalt.err (!%p270_p2)
}
   0x8   :  { %s274_s23 = scalar_lea.vmem %s49_s15, 2048  ;;  %p279_p4 = scmp.lt.s32.totalorder %s49_s15, %s49_s15 }
   0x9   :  { %p275_p3 = scmp.ne.s32.totalorder %s49_s15, %s274_s23  ;;  %p280_p5 = scmp.lt.s32.totalorder %s274_s23, %s274_s23 }
   0xb   :  { %p281_p6 = por %p280_p5, %p279_p4 }
   0xd   :  { %p282_p7 = pnand %p281_p6, %p275_p3 }
   0xf   :  { %285 = shalt.err (!%p282_p7)
}
  0x10   :  { %s313_s0 = smov 128   ;;  %s314_s24 = smov 8  }
  0x11   :  { %54 = dma.hbm_to_vmem [thread:$0]  %s372_s1, 2048, %s49_s15, [#allocation4], %s313_s0, %s313_s0, %s314_s24  }
  0x12   :  { %308 = dma.done.wait [#allocation4], 2048  }
  0x13   :  { %309 = vsyncadd [#allocation4], 4294965248  ;;  %v315_v1 = vmov 0.0|0.0   ;;  %vm316_vm0 = vmmov 0   ;;  %v317_v2 = vmov 0.0   ;;  %v63_v3 = vld [vmem:[#allocation3] sm:$0xff] }
  0x14   :  { %231 = vmatprep.subr.bf16.mxu0 %v315_v1  ;;  %228 = vmatprep.mubr.msk.f32.mxu0 %vm316_vm0, %v317_v2  ;;  %v64_v4 = vld [vmem:[#allocation3 + $0x8] sm:$0xff]  ;;  %v65_v5 = vld [vmem:[#allocation3 + $0x10] sm:$0xff]  ;;  %v66_v7 = vld [vmem:[#allocation3 + $0x18] sm:$0xff] }
  0x15   :  { %v232_v6 = vpack.c.bf16 %v64_v4, %v63_v3  ;;  %v235_v8 = vpack.c.bf16 %v66_v7, %v65_v5  ;;  %v67_v9 = vld [vmem:[#allocation3 + $0x20] sm:$0xff]  ;;  %v68_v10 = vld [vmem:[#allocation3 + $0x28] sm:$0xff]  ;;  %v69_v12 = vld [vmem:[#allocation3 + $0x30] sm:$0xff] }
  0x16   :  { %v238_v11 = vpack.c.bf16 %v68_v10, %v67_v9  ;;  %v70_v13 = vld [vmem:[#allocation3 + $0x38] sm:$0xff]  ;;  %v71_v15 = vld [vmem:[#allocation3 + $0x40] sm:$0xff]  ;;  %v72_v16 = vld [vmem:[#allocation3 + $0x48] sm:$0xff] }
  0x17   :  { %233 = vmatpush3.bf16.msra.mxu0 %v232_v6  ;;  %v241_v14 = vpack.c.bf16 %v70_v13, %v69_v12  ;;  %v244_v17 = vpack.c.bf16 %v72_v16, %v71_v15  ;;  %v73_v18 = vld [vmem:[#allocation3 + $0x50] sm:$0xff]  ;;  %v74_v19 = vld [vmem:[#allocation3 + $0x58] sm:$0xff]  ;;  %v75_v21 = vld [vmem:[#allocation3 + $0x60] sm:$0xff] }
  0x18   :  { %234 = vmatprep.subr.bf16.mxu0 %v315_v1  ;;  %v247_v20 = vpack.c.bf16 %v74_v19, %v73_v18  ;;  %v76_v22 = vld [vmem:[#allocation3 + $0x68] sm:$0xff]  ;;  %v77_v24 = vld [vmem:[#allocation3 + $0x70] sm:$0xff]  ;;  %v78_v25 = vld [vmem:[#allocation3 + $0x78] sm:$0xff] }
  0x19   :  { %v250_v23 = vpack.c.bf16 %v76_v22, %v75_v21  ;;  %v253_v26 = vpack.c.bf16 %v78_v25, %v77_v24  ;;  %v62_v27 = vld [vmem:[#allocation2] sm:$0xff] }
  0x1a   :  { %v178_v28 = vld [vmem:[%s373_s2] ss:$0 sm:$0xff] }
  0x1b   :  { %236 = vmatpush3.bf16.msra.mxu0 %v235_v8 }
  0x1c   :  { %237 = vmatprep.subr.bf16.mxu0 %v315_v1 }
  0x1f   :  { %239 = vmatpush3.bf16.msra.mxu0 %v238_v11 }
  0x20   :  { %240 = vmatprep.subr.bf16.mxu0 %v315_v1 }
  0x23   :  { %242 = vmatpush3.bf16.msra.mxu0 %v241_v14 }
  0x24   :  { %243 = vmatprep.subr.bf16.mxu0 %v315_v1 }
  0x27   :  { %245 = vmatpush3.bf16.msra.mxu0 %v244_v17 }
  0x28   :  { %246 = vmatprep.subr.bf16.mxu0 %v315_v1 }
  0x2b   :  { %248 = vmatpush3.bf16.msra.mxu0 %v247_v20 }
  0x2c   :  { %249 = vmatprep.subr.bf16.mxu0 %v315_v1 }
  0x2f   :  { %251 = vmatpush3.bf16.msra.mxu0 %v250_v23 }
  0x30   :  { %252 = vmatprep.subr.bf16.mxu0 %v315_v1 }
  0x33   :  { %254 = vmatpush3.bf16.msra.mxu0 %v253_v26 }
  0x36   :  { %229 = vmatmul.mubr.f32.vlgmr.msra.gmra.mrb[0].mxu0 %v62_v27 }
 0x109   :  { %v152_v29 = vpop.f32.mrb[0].mxu0 }
 0x10a   :  { %v153_v30 = vadd.f32 %v178_v28, %v152_v29  ;;  %v230_v31 = vpop.f32.mrb[1].mxu0 }
 0x10c   :  { %156 = vst [vmem:[#allocation6] sm:$0xff] %v153_v30 }
 0x10d   :  { %161 = vsyncadd [#allocation5], 64  ;;  %s318_s28 = smov [#allocation6]  }
 0x10e   :  { %s162_s29 = sshll.u32 %s318_s28, 4  ;;  %s163_s29 = int_to_ptr.vmem [resolvable:$true] %s162_s29 }
 0x10f   :  { %s286_s30 = scalar_lea.vmem %s163_s29, 64  ;;  %s290_s4 = scalar_lea.vmem %s163_s29, 128 }
 0x110   :  { %p287_p8 = scmp.ne.s32.totalorder %s163_s29, %s286_s30  ;;  %p291_p9 = scmp.lt.s32.totalorder %s163_s29, %s163_s29 }
 0x111   :  { %p292_p10 = scmp.lt.s32.totalorder %s290_s4, %s286_s30 }
 0x113   :  { %p293_p11 = por %p292_p10, %p291_p9 }
 0x115   :  { %p294_p12 = pnand %p293_p11, %p287_p8 }
 0x117   :  { %297 = shalt.err (!%p294_p12)
}
 0x118   :  { %s298_s2 = scalar_lea.hbm %s374_s3, 64 }
 0x119   :  { %p299_p13 = scmp.ne.s32.totalorder %s374_s3, %s298_s2  ;;  %p302_p0 = scmp.lt.u32.totalorder %s298_s2, %s374_s3 }
 0x11b   :  { %p304_p1 = pnand %p302_p0, %p299_p13 }
 0x11d   :  { %307 = shalt.err (!%p304_p1)
}
 0x11e   :  { %s319_s11 = smov 64   ;;  %s320_s12 = smov 4  }
 0x11f   :  { %168 = dma.vmem_to_hbm [thread:$0]  %s163_s29, 64, %s374_s3, [#allocation5], %s319_s11, %s319_s11, %s320_s12  }
 0x120   :  { %310 = dma.done.wait [#allocation5], 128  }
 0x121   :  { %311 = vsyncadd [#allocation5], 4294967168 }
 0x122   :  { %172 = vsyncpa [#allocation4], 1 }
 0x123   :  { %173 = vsyncpa [#allocation5], 1 }

</bundles_post_ra>
